<compile_context>
chip_gen: v5e
topology: v5e:2x2
jax: 0.10.0
libtpu: 0.0.40
codegen_flags: <defaults>
</compile_context>

<pallas_src>
import math

import jax
import jax.numpy as jnp
from jax.experimental import pallas as pl
from jax.experimental.pallas import tpu as pltpu

_SQRT_2_OVER_PI = math.sqrt(2.0 / math.pi)

# Per-array block byte budget by TPU generation.  Double-buffered in+out is
# 4x the budget: v7x 32 MiB (explicit 48 MiB vmem limit, 64 MiB physical/TC),
# v6e 16 MiB (< 32 MiB default), v5e 8 MiB (< 16 MiB default).
_BLOCK_BYTE_BUDGET = {"v7": 8 * 1024 * 1024, "v6": 4 * 1024 * 1024, "v5": 2 * 1024 * 1024}
_DEFAULT_BUDGET = 2 * 1024 * 1024
_VMEM_LIMIT = {"v7": 48 * 1024 * 1024}          # only raised where needed
_MIN_PROGRAMS = {"v7": 4}                        # 2 TCs on v7x -> >=2 blocks per TC
_SMALL_INPUT_BYTES = 512 * 1024                  # below this, plain jnp is faster


def _tpu_generation():
    try:
        kind = jax.devices()[0].device_kind.lower()
    except Exception:
        return "unknown"
    for gen in ("v7", "v6", "v5"):
        if gen in kind:
            return gen
    return "unknown"


def _make_gelu_kernel(compute_dtype):
    def kernel(x_ref, o_ref):
        x = x_ref[...].astype(compute_dtype)
        # Python-float constants are weakly typed -> arithmetic stays in compute_dtype.
        inner = _SQRT_2_OVER_PI * (x + 0.044715 * (x * x * x))
        y = 0.5 * x * (1.0 + jnp.tanh(inner))   # tanh rides the EUP slot
        o_ref[...] = y.astype(o_ref.dtype)
    return kernel


def _gelu_jnp(x):
    """Small-input fast path: fused XLA elementwise op, no pallas_call launch."""
    xf = x.astype(jnp.float32)
    inner = _SQRT_2_OVER_PI * (xf + 0.044715 * (xf * xf * xf))
    return (0.5 * xf * (1.0 + jnp.tanh(inner))).astype(x.dtype)


def _to_lane_dense_2d(x):
    """Reshape (free for contiguous data) to a 2D slab with a lane-friendly last dim."""
    hidden = x.shape[-1]
    n = x.size
    if hidden >= 128 and hidden % 128 == 0:
        return x.reshape(-1, hidden)
    if n % 128 == 0:
        # GELU is layout-agnostic: pick the widest multiple-of-128 divisor of n
        # (capped) so every store is a full unmasked vst.
        cap = min(n, 16384)
        lane = cap - (cap % 128)
        while lane >= 128:
            if n % lane == 0:
                return x.reshape(-1, lane)
            lane -= 128
    # TODO(synk): n % 128 != 0 -> ragged last dim (masked stores, still correct);
    # a pad-to-128 copy would make it lane-dense but costs an extra HBM pass.
    return x.reshape(-1, hidden)


def _choose_block(rows, lanes, itemsize, budget):
    """Byte-budgeted block shape; lanes multiple of 128 (or full), dtype-aware rows."""
    sub = max(8, 32 // itemsize)      # 8 for f32, 16 for bf16, 32 for int8/fp8
    if lanes % 128 == 0:
        max_lane = max(128, (budget // (sub * itemsize)) // 128 * 128)
        lane_tile = min(lanes, max_lane)
    else:
        lane_tile = lanes             # full ragged last dim (masked stores)
    row_budget = max(1, budget // (lane_tile * itemsize))
    if rows <= sub:
        block_rows = rows
    else:
        block_rows = min(rows, max(sub, (row_budget // sub) * sub))
    return block_rows, lane_tile, sub


def _ensure_min_programs(rows, lanes, block_rows, lane_tile, sub, min_programs):
    """Best-effort split so megacore parts ('parallel' grid) keep every TC busy."""
    if min_programs <= 1:
        return block_rows, lane_tile

    def nprog(br, lt):
        return pl.cdiv(rows, br) * pl.cdiv(lanes, lt)

    if nprog(block_rows, lane_tile) >= min_programs:
        return block_rows, lane_tile
    # Prefer splitting rows (keeps the lane width maximal / unmasked).
    if rows >= min_programs * sub:
        block_rows = min(block_rows, max(sub, (rows // min_programs) // sub * sub))
    if nprog(block_rows, lane_tile) >= min_programs:
        return block_rows, lane_tile
    # Split lanes in 128-wide units if still short.
    if lane_tile % 128 == 0:
        need = pl.cdiv(min_programs, pl.cdiv(rows, block_rows))
        if lanes >= need * 128:
            lane_tile = min(lane_tile, max(128, (lanes // need) // 128 * 128))
    return block_rows, lane_tile


def gelu(x, *, min_pallas_bytes=_SMALL_INPUT_BYTES):
    """GPT-2 tanh-approximate GELU, elementwise, via a Pallas TPU kernel."""
    itemsize = jnp.dtype(x.dtype).itemsize
    if x.size == 0 or x.ndim == 0 or x.size * itemsize < min_pallas_bytes:
        return _gelu_jnp(x)

    gen = _tpu_generation()
    budget = _BLOCK_BYTE_BUDGET.get(gen, _DEFAULT_BUDGET)

    orig_shape = x.shape
    x2d = _to_lane_dense_2d(x)
    rows, lanes = x2d.shape
    block_rows, lane_tile, sub = _choose_block(rows, lanes, itemsize, budget)
    block_rows, lane_tile = _ensure_min_programs(
        rows, lanes, block_rows, lane_tile, sub, _MIN_PROGRAMS.get(gen, 1))

    # No explicit padding: Pallas pads OOB block reads and masks tail-block writes.
    grid = (pl.cdiv(rows, block_rows), pl.cdiv(lanes, lane_tile))

    # bf16 compute on bf16-capable VPU/EUP generations; f32 upcast otherwise.
    if x.dtype == jnp.bfloat16 and gen in ("v6", "v7"):
        compute_dtype = jnp.bfloat16
    else:
        compute_dtype = jnp.float32

    out = pl.pallas_call(
        _make_gelu_kernel(compute_dtype),
        out_shape=jax.ShapeDtypeStruct((rows, lanes), x.dtype),
        grid_spec=pltpu.PrefetchScalarGridSpec(
            num_scalar_prefetch=0,
            grid=grid,
            in_specs=[pl.BlockSpec((block_rows, lane_tile), lambda i, j: (i, j))],
            out_specs=pl.BlockSpec((block_rows, lane_tile), lambda i, j: (i, j)),
        ),
        compiler_params=pltpu.CompilerParams(
            dimension_semantics=("parallel", "parallel"),
            vmem_limit_bytes=_VMEM_LIMIT.get(gen),
        ),
        cost_estimate=pl.CostEstimate(
            flops=10 * x.size,
            transcendentals=x.size,
            bytes_accessed=2 * x.size * itemsize,
        ),
    )(x2d)
    return out.reshape(orig_shape)


def gelu_ref(x):
    xf = x.astype(jnp.float32)
    inner = _SQRT_2_OVER_PI * (xf + 0.044715 * (xf * xf * xf))
    return (0.5 * xf * (1.0 + jnp.tanh(inner))).astype(x.dtype)


if __name__ == "__main__":
    keys = jax.random.split(jax.random.PRNGKey(0), 4)

    # 1) Spec-sized input (batch=2, seq=8, hidden=32, f32) -- force the Pallas path
    #    (below the small-input threshold, hidden<128 -> flattened to a (1,512) slab).
    x = jax.random.normal(keys[0], (2, 8, 32), dtype=jnp.float32)
    y = jax.block_until_ready(gelu(x, min_pallas_bytes=0))
    assert y.shape == x.shape and y.dtype == x.dtype
    assert jnp.allclose(y, gelu_ref(x), atol=1e-6, rtol=1e-6)

    # Same input via the default path (small-input jnp fast path).
    y_fast = jax.block_until_ready(gelu(x))
    assert jnp.allclose(y_fast, gelu_ref(x), atol=1e-6, rtol=1e-6)

    # 2) Larger lane-aligned f32 slab (~768 KiB): default path runs the Pallas kernel.
    x2 = jax.random.normal(keys[1], (4, 64, 768), dtype=jnp.float32)
    y2 = jax.block_until_ready(gelu(x2))
    assert jnp.allclose(y2, gelu_ref(x2), atol=1e-6, rtol=1e-6)

    # 3) Odd row count (non-multiple-of-8 rows), lane-aligned -- forced Pallas path.
    x3 = jax.random.normal(keys[2], (3, 7, 256), dtype=jnp.float32)
    y3 = jax.block_until_ready(gelu(x3, min_pallas_bytes=0))
    assert jnp.allclose(y3, gelu_ref(x3), atol=1e-6, rtol=1e-6)

    # 4) bf16 input (dtype-aware sublane rounding; bf16 compute on v6e/v7x).
    x4 = jax.random.normal(keys[3], (8, 128, 384), dtype=jnp.bfloat16)
    y4 = jax.block_until_ready(gelu(x4, min_pallas_bytes=0))
    assert y4.dtype == jnp.bfloat16
    assert jnp.allclose(y4.astype(jnp.float32), gelu_ref(x4).astype(jnp.float32),
                        atol=5e-2, rtol=5e-2)

    print("KERNEL_OK")
</pallas_src>

<mosaic_0001>
module attributes {stable_mosaic.version = 11 : i64} {
  func.func @kernel(%arg0: i32, %arg1: i32, %arg2: memref<1x512xf32, #tpu.memory_space<vmem>>, %arg3: memref<1x512xf32, #tpu.memory_space<vmem>>) attributes {dimension_semantics = [#tpu.dimension_semantics<parallel>, #tpu.dimension_semantics<parallel>], iteration_bounds = array<i64: 1, 1>, scalar_prefetch = 0 : i64, scratch_operands = 0 : i64, tpu.core_type = #tpu.core_type<tc>, window_params = [{transform_indices = @transform_0, window_bounds = array<i64: 1, 512>}, {transform_indices = @transform_1, window_bounds = array<i64: 1, 512>}]} {
    %c0 = arith.constant 0 : index
    %c0_0 = arith.constant 0 : index
    %0 = vector.load %arg2[%c0, %c0_0] : memref<1x512xf32, #tpu.memory_space<vmem>>, vector<1x512xf32>
    %1 = arith.mulf %0, %0 : vector<1x512xf32>
    %2 = arith.mulf %1, %0 : vector<1x512xf32>
    %cst = arith.constant 4.471500e-02 : f32
    %3 = vector.broadcast %cst : f32 to vector<1x512xf32>
    %4 = arith.mulf %3, %2 : vector<1x512xf32>
    %5 = arith.addf %0, %4 : vector<1x512xf32>
    %cst_1 = arith.constant 0.797884583 : f32
    %6 = vector.broadcast %cst_1 : f32 to vector<1x512xf32>
    %7 = arith.mulf %6, %5 : vector<1x512xf32>
    %cst_2 = arith.constant 5.000000e-01 : f32
    %8 = vector.broadcast %cst_2 : f32 to vector<1x512xf32>
    %9 = arith.mulf %8, %0 : vector<1x512xf32>
    %10 = math.tanh %7 : vector<1x512xf32>
    %cst_3 = arith.constant 1.000000e+00 : f32
    %11 = vector.broadcast %cst_3 : f32 to vector<1x512xf32>
    %12 = arith.addf %11, %10 : vector<1x512xf32>
    %13 = arith.mulf %9, %12 : vector<1x512xf32>
    %c0_4 = arith.constant 0 : index
    %c0_5 = arith.constant 0 : index
    %14 = vector.load %arg3[%c0_4, %c0_5] : memref<1x512xf32, #tpu.memory_space<vmem>>, vector<1x512xf32>
    tpu.vector_store %arg3[%c0_4, %c0_5], %13 {strides = array<i32>} : memref<1x512xf32, #tpu.memory_space<vmem>>, vector<1x512xf32>,
    return
  }
  func.func @transform_0(%arg0: i32, %arg1: i32) -> (i32, i32) {
    %c0_i32 = arith.constant 0 : i32
    return %arg0, %arg1 : i32, i32
  }
  func.func @transform_1(%arg0: i32, %arg1: i32) -> (i32, i32) {
    %c0_i32 = arith.constant 0 : i32
    return %arg0, %arg1 : i32, i32
  }
}

</mosaic_0001>

<bundles_post_ra>
// kernel: tpu_custom_call.1
= control target key start
LH: loop header
LB: loop body
LE: loop exit
PB: predicated region body
PF: predicated region fallthrough
CT: control target
= control target key end

     0   :  { %6 = vsyncpa [#allocation3], 0  ;;  %s129_s0 = inlined_call_operand.hbm [shape: f32[1,512], index: 0, kind: input, shape index: {}]   ;;  %s130_s1 = inlined_call_operand.hbm [shape: f32[1,512], index: 1, kind: output, shape index: {}]  }
   0x1   :  { %7 = vsyncpa [#allocation4], 0  ;;  %s13_s8 = sshll.u32 %s129_s0, 4  ;;  %s111_s9 = smov [#allocation2]   ;;  %s14_s8 = int_to_ptr.hbm [resolvable:$true] %s13_s8 }
   0x2   :  { %s15_s10 = sshll.u32 %s111_s9, 4  ;;  %s16_s10 = int_to_ptr.vmem [resolvable:$true] %s15_s10 }
   0x3   :  { %18 = dma.hbm_to_vmem [thread:$0]  %s14_s8, 64, %s16_s10, [#allocation3]  }
   0x4   :  { %107 = dma.done.wait [#allocation3], 64  }
   0x5   :  { %108 = vsyncadd [#allocation3], 4294967232  ;;  %v23_v0 = vld [vmem:[#allocation2] sm:$0xf]  ;;  %v33_v6 = vlaneseq  ;;  %s112_s11 = smov [#allocation5]   ;;  %s45_s14 = sshll.u32 %s130_s1, 4  ;;  %s46_s14 = int_to_ptr.hbm [resolvable:$true] %s45_s14 }
   0x6   :  { %v24_v1 = vmul.f32 %v23_v0, %v23_v0  ;;  %v29_v7 = vmul.f32 0.5, %v23_v0  ;;  %s43_s12 = sshll.u32 %s112_s11, 4  ;;  %s44_s12 = int_to_ptr.vmem [resolvable:$true] %s43_s12 }
   0x7   :  { %vm35_vm0 = vcmp.lt.s32.totalorder %v33_v6, 512 }
   0x8   :  { %v25_v2 = vmul.f32 %v24_v1, %v23_v0 }
   0xa   :  { %v26_v3 = vmul.f32 0.044715, %v25_v2 }
   0xc   :  { %v27_v4 = vadd.f32 %v26_v3, %v23_v0 }
   0xe   :  { %v28_v5 = vmul.f32 0.7978846, %v27_v4 }
  0x10   :  { %57 = vtanh.f32 %v28_v5 }
  0x16   :  { %v58_v8 = vpop.eup %57 }
  0x17   :  { %v31_v9 = vadd.f32 1.0, %v58_v8 }
  0x19   :  { %v32_v10 = vmul.f32 %v31_v9, %v29_v7 }
  0x1b   :  { %37 = vst.msk [vmem:[#allocation5] sm:$0xf] %vm35_vm0, %v32_v10 }
  0x1c   :  { %48 = dma.vmem_to_hbm [thread:$0]  %s44_s12, 64, %s46_s14, [#allocation4]  }
  0x1d   :  { %109 = dma.done.wait [#allocation4], 64  }
  0x1e   :  { %110 = vsyncadd [#allocation4], 4294967232 }
  0x1f   :  { %53 = vsyncpa [#allocation3], 1 }
  0x20   :  { %54 = vsyncpa [#allocation4], 1 }

</bundles_post_ra>
